<compile_context>
chip_gen: v5e
topology: v5e:2x2
jax: 0.10.0
libtpu: 0.0.40
codegen_flags: <defaults>
</compile_context>

<pallas_src>
import functools

import jax
import jax.numpy as jnp
from jax.experimental import pallas as pl
from jax.experimental.pallas import tpu as pltpu


ROW_TILE = 2048   # target rows per grid step


def _cdiv(a, b):
    return -(-a // b)


def _round_up(n, m):
    return ((n + m - 1) // m) * m


def mlp_softmax_kernel(x_ref, w1_ref, b1_ref, w2_ref, b2_ref, w3_ref, b3_ref,
                       out_ref):
    # Cast x to bf16 at the MXU input only (VPU pack, cheap; f32 read from HBM).
    x = x_ref[...].astype(jnp.bfloat16)                          # (TB, in)

    # Layer 1: Linear + ReLU (MXU bf16 x bf16 -> f32 accumulate)
    h1 = jnp.dot(x, w1_ref[...], preferred_element_type=jnp.float32)
    h1 = jnp.maximum(h1 + b1_ref[...], 0.0)                      # f32 VPU work

    # Layer 2: Linear + ReLU
    h2 = jnp.dot(h1.astype(jnp.bfloat16), w2_ref[...],
                 preferred_element_type=jnp.float32)
    h2 = jnp.maximum(h2 + b2_ref[...], 0.0)

    # Layer 3: Linear straight to the true output width O (no lane padding).
    logits = jnp.dot(h2.astype(jnp.bfloat16), w3_ref[...],
                     preferred_element_type=jnp.float32)
    logits = logits + b3_ref[...]                                # (TB, O)

    # Numerically-stable softmax over the real O columns; exact normalization.
    m = jnp.max(logits, axis=-1, keepdims=True)
    e = jnp.exp(logits - m)
    denom = jnp.sum(e, axis=-1, keepdims=True)
    out_ref[...] = (e / denom).astype(out_ref.dtype)


@functools.partial(jax.jit, static_argnames=("row_tile",))
def mlp_forward(x, w1, b1, w2, b2, w3, b3, *, row_tile=ROW_TILE):
    B, in_dim = x.shape
    H = w1.shape[1]
    O = w3.shape[1]

    # bf16 MXU operands (no-op if already stored bf16; biases stay f32).
    w1_bf = w1.astype(jnp.bfloat16)
    w2_bf = w2.astype(jnp.bfloat16)
    w3_bf = w3.astype(jnp.bfloat16)

    # ---- balanced row tiling ------------------------------------------------
    n_tiles = max(1, _cdiv(B, row_tile))
    if B >= 16 and n_tiles < 2:
        n_tiles = 2                       # let the parallel axis span both TCs (v7x)
    tb = _round_up(_cdiv(B, n_tiles), 8)  # f32 sublane packing
    Bp = n_tiles * tb
    if Bp != B:
        x = jnp.pad(x, ((0, Bp - B), (0, 0)))

    # ---- pallas_call ---------------------------------------------------------
    # x / out are streamed per batch tile; weights & biases map to block (0, 0)
    # on every grid step -> they stay resident in VMEM across the whole grid.
    resident = lambda shape: pl.BlockSpec(shape, lambda i: (0, 0))

    out = pl.pallas_call(
        mlp_softmax_kernel,
        out_shape=jax.ShapeDtypeStruct((Bp, O), jnp.float32),
        grid_spec=pltpu.PrefetchScalarGridSpec(
            num_scalar_prefetch=0,
            grid=(n_tiles,),
            in_specs=[
                pl.BlockSpec((tb, in_dim), lambda i: (i, 0)),    # x tile (f32)
                resident((in_dim, H)), resident((1, H)),         # w1, b1
                resident((H, H)),      resident((1, H)),         # w2, b2
                resident((H, O)),      resident((1, O)),         # w3, b3
            ],
            out_specs=pl.BlockSpec((tb, O), lambda i: (i, 0)),   # true width
        ),
        compiler_params=pltpu.CompilerParams(
            dimension_semantics=("parallel",),                   # megacore shard
        ),
    )(x, w1_bf, b1, w2_bf, b2, w3_bf, b3)

    return out if Bp == B else out[:B]


def init_params(key, input_dim, hidden_dim, output_dim):
    # Deterministic init (roughly matching nn.Linear's uniform fan-in scaling).
    # Weights are stored bf16 once here (MXU operands); biases stay f32.
    ks = jax.random.split(key, 6)

    def lin(kw, kb, fan_in, fan_out):
        bound = 1.0 / jnp.sqrt(fan_in)
        w = jax.random.uniform(kw, (fan_in, fan_out), jnp.float32, -bound, bound)
        b = jax.random.uniform(kb, (1, fan_out), jnp.float32, -bound, bound)
        return w.astype(jnp.bfloat16), b

    w1, b1 = lin(ks[0], ks[1], input_dim, hidden_dim)
    w2, b2 = lin(ks[2], ks[3], hidden_dim, hidden_dim)
    w3, b3 = lin(ks[4], ks[5], hidden_dim, output_dim)
    return w1, b1, w2, b2, w3, b3


if __name__ == "__main__":
    input_dim, hidden_dim, output_dim = 32, 128, 16
    batch = 8

    key = jax.random.PRNGKey(0)
    k_x, k_p = jax.random.split(key)

    x = jax.random.normal(k_x, (batch, input_dim), dtype=jnp.float32)
    params = init_params(k_p, input_dim, hidden_dim, output_dim)

    out = mlp_forward(x, *params)
    out = jax.block_until_ready(out)

    # Reference matching the kernel's precision (bf16 MXU operands, f32 acc).
    w1, b1, w2, b2, w3, b3 = params
    bf = lambda a: a.astype(jnp.bfloat16)
    h = jnp.maximum(
        jnp.dot(bf(x), w1, preferred_element_type=jnp.float32) + b1, 0.0)
    h = jnp.maximum(
        jnp.dot(bf(h), w2, preferred_element_type=jnp.float32) + b2, 0.0)
    logits = jnp.dot(bf(h), w3, preferred_element_type=jnp.float32) + b3
    ref = jax.nn.softmax(logits, axis=-1)

    assert out.shape == (batch, output_dim)
    assert jnp.allclose(out, ref, atol=2e-2, rtol=2e-2), "mismatch vs reference"
    assert jnp.allclose(jnp.sum(out, axis=-1), 1.0, atol=1e-4), "rows not normalized"

    # TODO(synk): the PyTorch module's act() (Categorical sampling / log_prob
    # bookkeeping) is host-side policy logic, not part of forward(); not ported.

    print("KERNEL_OK")
</pallas_src>

<mosaic_0001>
module attributes {stable_mosaic.version = 11 : i64} {
  func.func @mlp_softmax_kernel(%arg0: i32, %arg1: memref<8x32xf32, #tpu.memory_space<vmem>>, %arg2: memref<32x128xbf16, #tpu.memory_space<vmem>>, %arg3: memref<1x128xf32, #tpu.memory_space<vmem>>, %arg4: memref<128x128xbf16, #tpu.memory_space<vmem>>, %arg5: memref<1x128xf32, #tpu.memory_space<vmem>>, %arg6: memref<128x16xbf16, #tpu.memory_space<vmem>>, %arg7: memref<1x16xf32, #tpu.memory_space<vmem>>, %arg8: memref<8x16xf32, #tpu.memory_space<vmem>>) attributes {dimension_semantics = [#tpu.dimension_semantics<parallel>], iteration_bounds = array<i64: 1>, scalar_prefetch = 0 : i64, scratch_operands = 0 : i64, tpu.core_type = #tpu.core_type<tc>, window_params = [{transform_indices = @transform_0, window_bounds = array<i64: 8, 32>}, {pipeline_mode = #tpu.pipeline_mode<synchronous>, transform_indices = @transform_1, window_bounds = array<i64: 32, 128>}, {pipeline_mode = #tpu.pipeline_mode<synchronous>, transform_indices = @transform_2, window_bounds = array<i64: 1, 128>}, {pipeline_mode = #tpu.pipeline_mode<synchronous>, transform_indices = @transform_3, window_bounds = array<i64: 128, 128>}, {pipeline_mode = #tpu.pipeline_mode<synchronous>, transform_indices = @transform_4, window_bounds = array<i64: 1, 128>}, {pipeline_mode = #tpu.pipeline_mode<synchronous>, transform_indices = @transform_5, window_bounds = array<i64: 128, 16>}, {pipeline_mode = #tpu.pipeline_mode<synchronous>, transform_indices = @transform_6, window_bounds = array<i64: 1, 16>}, {transform_indices = @transform_7, window_bounds = array<i64: 8, 16>}]} {
    %c0 = arith.constant 0 : index
    %c0_0 = arith.constant 0 : index
    %0 = vector.load %arg1[%c0, %c0_0] : memref<8x32xf32, #tpu.memory_space<vmem>>, vector<8x32xf32>
    %1 = arith.truncf %0 : vector<8x32xf32> to vector<8x32xbf16>
    %c0_1 = arith.constant 0 : index
    %c0_2 = arith.constant 0 : index
    %2 = vector.load %arg2[%c0_1, %c0_2] : memref<32x128xbf16, #tpu.memory_space<vmem>>, vector<32x128xbf16>
    %cst = arith.constant dense<0.000000e+00> : vector<8x128xf32>
    %3 = tpu.matmul %1, %2, %cst {dimension_numbers = #tpu.dot_dimension_numbers<[1], [0], [0], [1], [0, 0, 1, 1], [], []>} : vector<8x32xbf16>, vector<32x128xbf16>, vector<8x128xf32> -> vector<8x128xf32>
    %c0_3 = arith.constant 0 : index
    %c0_4 = arith.constant 0 : index
    %4 = vector.load %arg3[%c0_3, %c0_4] : memref<1x128xf32, #tpu.memory_space<vmem>>, vector<1x128xf32>
    %5 = vector.broadcast %4 : vector<1x128xf32> to vector<8x128xf32>
    %6 = arith.addf %3, %5 : vector<8x128xf32>
    %cst_5 = arith.constant 0.000000e+00 : f32
    %7 = vector.broadcast %cst_5 : f32 to vector<8x128xf32>
    %8 = arith.maximumf %6, %7 : vector<8x128xf32>
    %9 = arith.truncf %8 : vector<8x128xf32> to vector<8x128xbf16>
    %c0_6 = arith.constant 0 : index
    %c0_7 = arith.constant 0 : index
    %10 = vector.load %arg4[%c0_6, %c0_7] : memref<128x128xbf16, #tpu.memory_space<vmem>>, vector<128x128xbf16>
    %cst_8 = arith.constant dense<0.000000e+00> : vector<8x128xf32>
    %11 = tpu.matmul %9, %10, %cst_8 {dimension_numbers = #tpu.dot_dimension_numbers<[1], [0], [0], [1], [0, 0, 1, 1], [], []>} : vector<8x128xbf16>, vector<128x128xbf16>, vector<8x128xf32> -> vector<8x128xf32>
    %c0_9 = arith.constant 0 : index
    %c0_10 = arith.constant 0 : index
    %12 = vector.load %arg5[%c0_9, %c0_10] : memref<1x128xf32, #tpu.memory_space<vmem>>, vector<1x128xf32>
    %13 = vector.broadcast %12 : vector<1x128xf32> to vector<8x128xf32>
    %14 = arith.addf %11, %13 : vector<8x128xf32>
    %cst_11 = arith.constant 0.000000e+00 : f32
    %15 = vector.broadcast %cst_11 : f32 to vector<8x128xf32>
    %16 = arith.maximumf %14, %15 : vector<8x128xf32>
    %17 = arith.truncf %16 : vector<8x128xf32> to vector<8x128xbf16>
    %c0_12 = arith.constant 0 : index
    %c0_13 = arith.constant 0 : index
    %18 = vector.load %arg6[%c0_12, %c0_13] : memref<128x16xbf16, #tpu.memory_space<vmem>>, vector<128x16xbf16>
    %cst_14 = arith.constant dense<0.000000e+00> : vector<8x16xf32>
    %19 = tpu.matmul %17, %18, %cst_14 {dimension_numbers = #tpu.dot_dimension_numbers<[1], [0], [0], [1], [0, 0, 1, 1], [], []>} : vector<8x128xbf16>, vector<128x16xbf16>, vector<8x16xf32> -> vector<8x16xf32>
    %c0_15 = arith.constant 0 : index
    %c0_16 = arith.constant 0 : index
    %20 = vector.load %arg7[%c0_15, %c0_16] : memref<1x16xf32, #tpu.memory_space<vmem>>, vector<1x16xf32>
    %21 = vector.broadcast %20 : vector<1x16xf32> to vector<8x16xf32>
    %22 = arith.addf %19, %21 : vector<8x16xf32>
    %cst_17 = arith.constant dense<0xFF800000> : vector<8xf32>
    %23 = vector.multi_reduction <maximumf>, %22, %cst_17 [1] : vector<8x16xf32> to vector<8xf32>
    %24 = vector.shape_cast %23 : vector<8xf32> to vector<8x1xf32>
    %25 = vector.broadcast %24 : vector<8x1xf32> to vector<8x16xf32>
    %26 = arith.subf %22, %25 : vector<8x16xf32>
    %27 = math.exp %26 : vector<8x16xf32>
    %cst_18 = arith.constant dense<0.000000e+00> : vector<8xf32>
    %28 = vector.multi_reduction <add>, %27, %cst_18 [1] : vector<8x16xf32> to vector<8xf32>
    %29 = vector.shape_cast %28 : vector<8xf32> to vector<8x1xf32>
    %30 = vector.broadcast %29 : vector<8x1xf32> to vector<8x16xf32>
    %31 = arith.divf %27, %30 : vector<8x16xf32>
    %c0_19 = arith.constant 0 : index
    %c0_20 = arith.constant 0 : index
    %32 = vector.load %arg8[%c0_19, %c0_20] : memref<8x16xf32, #tpu.memory_space<vmem>>, vector<8x16xf32>
    tpu.vector_store %arg8[%c0_19, %c0_20], %31 {strides = array<i32>} : memref<8x16xf32, #tpu.memory_space<vmem>>, vector<8x16xf32>,
    return
  }
  func.func @transform_0(%arg0: i32) -> (i32, i32) {
    %c0_i32 = arith.constant 0 : i32
    %c0_i32_0 = arith.constant 0 : i32
    return %arg0, %c0_i32 : i32, i32
  }
  func.func @transform_1(%arg0: i32) -> (i32, i32) {
    %c0_i32 = arith.constant 0 : i32
    %c0_i32_0 = arith.constant 0 : i32
    %c0_i32_1 = arith.constant 0 : i32
    return %c0_i32, %c0_i32_0 : i32, i32
  }
  func.func @transform_2(%arg0: i32) -> (i32, i32) {
    %c0_i32 = arith.constant 0 : i32
    %c0_i32_0 = arith.constant 0 : i32
    %c0_i32_1 = arith.constant 0 : i32
    return %c0_i32, %c0_i32_0 : i32, i32
  }
  func.func @transform_3(%arg0: i32) -> (i32, i32) {
    %c0_i32 = arith.constant 0 : i32
    %c0_i32_0 = arith.constant 0 : i32
    %c0_i32_1 = arith.constant 0 : i32
    return %c0_i32, %c0_i32_0 : i32, i32
  }
  func.func @transform_4(%arg0: i32) -> (i32, i32) {
    %c0_i32 = arith.constant 0 : i32
    %c0_i32_0 = arith.constant 0 : i32
    %c0_i32_1 = arith.constant 0 : i32
    return %c0_i32, %c0_i32_0 : i32, i32
  }
  func.func @transform_5(%arg0: i32) -> (i32, i32) {
    %c0_i32 = arith.constant 0 : i32
    %c0_i32_0 = arith.constant 0 : i32
    %c0_i32_1 = arith.constant 0 : i32
    return %c0_i32, %c0_i32_0 : i32, i32
  }
  func.func @transform_6(%arg0: i32) -> (i32, i32) {
    %c0_i32 = arith.constant 0 : i32
    %c0_i32_0 = arith.constant 0 : i32
    %c0_i32_1 = arith.constant 0 : i32
    return %c0_i32, %c0_i32_0 : i32, i32
  }
  func.func @transform_7(%arg0: i32) -> (i32, i32) {
    %c0_i32 = arith.constant 0 : i32
    %c0_i32_0 = arith.constant 0 : i32
    return %arg0, %c0_i32 : i32, i32
  }
}

</mosaic_0001>

<bundles_post_ra>
// kernel: mlp_forward.1
= control target key start
LH: loop header
LB: loop body
LE: loop exit
PB: predicated region body
PF: predicated region fallthrough
CT: control target
= control target key end

     0   :  { %12 = vsyncpa [#allocation3], 0  ;;  %s559_s0 = inlined_call_operand.vmem [shape: f32[8,32], index: 0, kind: input, shape index: {}]   ;;  %s560_s1 = inlined_call_operand.hbm [shape: bf16[32,128], index: 1, kind: input, shape index: {}]   ;;  %s561_s2 = inlined_call_operand.vmem [shape: f32[1,128], index: 2, kind: input, shape index: {}]   ;;  %s562_s3 = inlined_call_operand.vmem [shape: bf16[128,128], index: 3, kind: input, shape index: {}]   ;;  %s563_s4 = inlined_call_operand.vmem [shape: f32[1,128], index: 4, kind: input, shape index: {}]   ;;  %s564_s5 = inlined_call_operand.vmem [shape: bf16[128,16], index: 5, kind: input, shape index: {}]   ;;  %s565_s6 = inlined_call_operand.vmem [shape: f32[1,16], index: 6, kind: input, shape index: {}]   ;;  %s566_s7 = inlined_call_operand.hbm [shape: f32[8,16], index: 7, kind: output, shape index: {}]  }
   0x1   :  { %13 = vsyncpa [#allocation4], 0  ;;  %s20_s26 = sshll.u32 %s560_s1, 4  ;;  %s446_s27 = smov [#allocation2]   ;;  %s21_s26 = int_to_ptr.hbm [resolvable:$true] %s20_s26 }
   0x2   :  { %s22_s28 = sshll.u32 %s446_s27, 4  ;;  %s447_s29 = smov 64   ;;  %s23_s28 = int_to_ptr.vmem [resolvable:$true] %s22_s28 }
   0x3   :  { %s448_s30 = smov 4  }
   0x4   :  { %28 = dma.hbm_to_vmem [thread:$0]  %s21_s26, 256, %s23_s28, [#allocation3], %s447_s29, %s447_s29, %s448_s30  }
   0x5   :  { %442 = dma.done.wait [#allocation3], 256  }
   0x6   :  { %443 = vsyncadd [#allocation3], 4294967040  ;;  %v366_v0 = vld [vmem:[#allocation2 + $0x8] sm:$0xff]  ;;  %v374_v1 = vld [vmem:[%s562_s3 + $0x38] sm:$0xff]  ;;  %vm66_vm0 = vcmask 261120   ;;  %vm249_vm1 = vcmask 130048  }
   0x7   :  { %76 = vmatpush.bf16.msra.mxu0 %v366_v0  ;;  %v365_v2 = vld [vmem:[#allocation2] sm:$0xff]  ;;  %153 = vmatpush.bf16.msra.mxu1 %v374_v1  ;;  %v373_v4 = vld [vmem:[%s562_s3 + $0x30] sm:$0xff]  ;;  %v372_v6 = vld [vmem:[%s562_s3 + $0x28] sm:$0xff]  ;;  %s282_s20 = sshll.u32 %s566_s7, 4  ;;  %s283_s20 = int_to_ptr.hbm [resolvable:$true] %s282_s20 }
   0x8   :  { %v44_v3 = vld [vmem:[%s559_s0] sm:$0xff]  ;;  %v370_v8 = vld [vmem:[%s562_s3 + $0x18] sm:$0xff]  ;;  %v369_v9 = vld [vmem:[%s562_s3 + $0x10] sm:$0xff] }
   0x9   :  { %v45_v5 = vpack.c.bf16 %v44_v3, %v44_v3  ;;  %v371_v7 = vld [vmem:[%s562_s3 + $0x20] sm:$0xff]  ;;  %v368_v10 = vld [vmem:[%s562_s3 + $0x8] sm:$0xff]  ;;  %v382_v12 = vld [vmem:[%s564_s5 + $0x38] sm:$0xff] }
   0xa   :  { %v367_v11 = vld [vmem:[%s562_s3] sm:$0xff]  ;;  %236 = vmatpush.bf16.msra.mxu2 %v382_v12  ;;  %v381_v13 = vld [vmem:[%s564_s5 + $0x30] sm:$0xff]  ;;  %v380_v14 = vld [vmem:[%s564_s5 + $0x28] sm:$0xff] }
   0xb   :  { %77 = vmatpush.bf16.msra.mxu0 %v365_v2  ;;  %154 = vmatpush.bf16.msra.mxu1 %v373_v4  ;;  %v379_v15 = vld [vmem:[%s564_s5 + $0x20] sm:$0xff]  ;;  %v378_v16 = vld [vmem:[%s564_s5 + $0x18] sm:$0xff]  ;;  %v377_v17 = vld [vmem:[%s564_s5 + $0x10] sm:$0xff] }
   0xc   :  { %v387_v18 = vld [vmem:[%s561_s2] ss:$0 sm:$0xff]  ;;  %v376_v24 = vld [vmem:[%s564_s5 + $0x8] sm:$0xff] }
   0xd   :  { %v375_v25 = vld [vmem:[%s564_s5] sm:$0xff] }
   0xe   :  { %300 = vmatmul.msk.bf16.vlgmr.msra.gmra.mxu0 %vm66_vm0, %v45_v5  ;;  %237 = vmatpush.bf16.msra.mxu2 %v381_v13  ;;  %v388_v26 = vld [vmem:[%s563_s4] ss:$0 sm:$0xff]  ;;  %s449_s4 = smov [#allocation5]  }
   0xf   :  { %155 = vmatpush.bf16.msra.mxu1 %v372_v6  ;;  %v389_v32 = vld [vmem:[%s565_s6] ss:$0 sm:$0xff]  ;;  %s280_s5 = sshll.u32 %s449_s4, 4  ;;  %s281_s5 = int_to_ptr.vmem [resolvable:$true] %s280_s5 }
  0x12   :  { %238 = vmatpush.bf16.msra.mxu2 %v380_v14 }
  0x13   :  { %156 = vmatpush.bf16.msra.mxu1 %v371_v7 }
  0x16   :  { %239 = vmatpush.bf16.msra.mxu2 %v379_v15 }
  0x17   :  { %157 = vmatpush.bf16.msra.mxu1 %v370_v8 }
  0x1a   :  { %240 = vmatpush.bf16.msra.mxu2 %v378_v16 }
  0x1b   :  { %158 = vmatpush.bf16.msra.mxu1 %v369_v9 }
  0x1e   :  { %241 = vmatpush.bf16.msra.mxu2 %v377_v17 }
  0x1f   :  { %159 = vmatpush.bf16.msra.mxu1 %v368_v10 }
  0x22   :  { %242 = vmatpush.bf16.msra.mxu2 %v376_v24 }
  0x23   :  { %160 = vmatpush.bf16.msra.mxu1 %v367_v11 }
  0x26   :  { %243 = vmatpush.bf16.msra.mxu2 %v375_v25 }
  0x8b   :  { %v79_v19 = vpop.f32.mrf.mxu0 }
  0x8c   :  { %v80_v20 = vadd.f32 %v387_v18, %v79_v19 }
  0x8e   :  { %v83_v21 = vmax.f32 %v80_v20, 0.0 }
  0x90   :  { %v84_v22 = vpack.c.bf16 %v83_v21, %v83_v21 }
  0x92   :  { %161 = vmatmul.bf16.vlgmr.msra.gmra.mxu1 %v84_v22 }
  0x93   :  { %v81_v23 = vpop.f32.mrf.mxu0 }
 0x10f   :  { %v162_v27 = vpop.f32.mrf.mxu1 }
 0x110   :  { %v163_v28 = vadd.f32 %v388_v26, %v162_v27 }
 0x112   :  { %v166_v29 = vmax.f32 %v163_v28, 0.0 }
 0x114   :  { %v167_v30 = vpack.c.bf16 %v166_v29, %v166_v29 }
 0x116   :  { %244 = vmatmul.bf16.vlgmr.msra.gmra.mxu2 %v167_v30 }
 0x117   :  { %v164_v31 = vpop.f32.mrf.mxu1 }
 0x199   :  { %v245_v33 = vpop.f32.mrf.mxu2 }
 0x19a   :  { %v246_v34 = vadd.f32 %v389_v32, %v245_v33 }
 0x19c   :  { %v250_v35 = vsel %vm249_vm1, %v246_v34, -inf }
 0x19d   :  { %251 = vmax.xlane.f32.xlu0 %v250_v35 }
 0x1a1   :  { %v247_v36 = vpop.f32.mrf.mxu2 }
 0x210   :  { %v252_v37 = vpop.xlane.xlu0 %251 }
 0x211   :  { %v253_v38 = vsub.f32 %v246_v34, %v252_v37 }
 0x213   :  { %v254_v39 = vmul.f32 1.442695, %v253_v38 }
 0x215   :  { %390 = vpow2.f32 %v254_v39 }
 0x21b   :  { %v391_v40 = vpop.eup %390 }
 0x21c   :  { %v256_v41 = vsel %vm249_vm1, %v391_v40, 0.0 }
 0x21d   :  { %257 = vadd.xlane.f32.xlu0 %v256_v41 }
 0x290   :  { %v258_v42 = vpop.xlane.xlu0 %257 }
 0x291   :  { %392 = vrcp.f32 %v258_v42  ;;  %v270_v46 = vand.u32 2147483648, %v258_v42  ;;  %v268_v48 = vand.u32 2147483647, %v258_v42  ;;  %vm264_vm3 = vweird.f32 %v258_v42 }
 0x293   :  { %v271_v50 = vor.u32 1.1754944e-38, %v270_v46  ;;  %vm269_vm5 = vcmp.eq.f32.partialorder %v268_v48, 8.507059e+37 }
 0x297   :  { %v393_v43 = vpop.eup %392 }
 0x298   :  { %v260_v44 = vmul.f32 %v393_v43, %v258_v42  ;;  %vm265_vm2 = vweird.f32 %v393_v43 }
 0x299   :  { %vm266_vm4 = vmor %vm264_vm3, %vm265_vm2 }
 0x29a   :  { %v261_v45 = vsub.f32 1.0, %v260_v44 }
 0x29c   :  { %v262_v47 = vmul.f32 %v393_v43, %v261_v45 }
 0x29e   :  { %v263_v49 = vadd.f32 %v393_v43, %v262_v47 }
 0x2a0   :  { %v267_v51 = vsel %vm266_vm4, %v393_v43, %v263_v49 }
 0x2a1   :  { %v272_v52 = vsel %vm269_vm5, %v271_v50, %v267_v51 }
 0x2a2   :  { %v273_v53 = vmul.f32 %v391_v40, %v272_v52 }
 0x2a4   :  { %274 = vst.msk [vmem:[#allocation5] sm:$0xff] %vm249_vm1, %v273_v53 }
 0x2a5   :  { %285 = dma.vmem_to_hbm [thread:$0]  %s281_s5, 128, %s283_s20, [#allocation4]  }
 0x2a6   :  { %444 = dma.done.wait [#allocation4], 128  }
 0x2a7   :  { %445 = vsyncadd [#allocation4], 4294967168 }
 0x2a8   :  { %290 = vsyncpa [#allocation3], 1 }
 0x2a9   :  { %291 = vsyncpa [#allocation4], 1 }

</bundles_post_ra>
